<compile_context>
chip_gen: v7x
topology: tpu7x:2x2x1
jax: 0.10.0
libtpu: 0.0.40
codegen_flags: <defaults>
</compile_context>

<pallas_src>
import functools
import math

import jax
import jax.numpy as jnp
from jax.experimental import pallas as pl
from jax.experimental.pallas import tpu as pltpu


# ---------------------------------------------------------------------------
# Kernels
# ---------------------------------------------------------------------------

def _add_pe_kernel(x_ref, pe_ref, o_ref):
    # x_ref: (TS, B, D), pe_ref: (TS, 1, D) -> broadcast add over the batch axis.
    x = x_ref[...].astype(jnp.float32)
    pe = pe_ref[...].astype(jnp.float32)
    o_ref[...] = (x + pe).astype(o_ref.dtype)


def _add_pe_dropout_kernel(x_ref, pe_ref, bits_ref, o_ref, *, threshold, inv_keep):
    # Inverted dropout: keep with prob (1-p), scale survivors by 1/(1-p).
    y = x_ref[...].astype(jnp.float32) + pe_ref[...].astype(jnp.float32)
    keep = bits_ref[...] >= jnp.uint32(threshold)          # drop prob ~ p
    o_ref[...] = jnp.where(keep, y * jnp.float32(inv_keep), 0.0).astype(o_ref.dtype)


# ---------------------------------------------------------------------------
# Parameter setup (deterministic, plain JAX)
# ---------------------------------------------------------------------------

def make_pe(max_len, d_model, dtype=jnp.float32):
    """Positional-encoding buffer, shape (max_len, 1, d_model) like the torch buffer."""
    position = jnp.arange(max_len, dtype=jnp.float32)[:, None]                  # (L, 1)
    div_term = jnp.exp(
        jnp.arange(0, d_model, 2, dtype=jnp.float32) * (-math.log(10000.0) / d_model)
    )                                                                           # (D/2,)
    pe = jnp.zeros((max_len, d_model), jnp.float32)
    pe = pe.at[:, 0::2].set(jnp.sin(position * div_term))
    pe = pe.at[:, 1::2].set(jnp.cos(position * div_term))
    return pe[:, None, :].astype(dtype)                                         # (L, 1, D)


# ---------------------------------------------------------------------------
# Wrapper
# ---------------------------------------------------------------------------

_TARGET_TILE_BYTES = 1 << 20   # ~1 MiB x-tile: amortizes per-step cost, fits every
                               # generation's default scoped VMEM (v5e 16 MiB and up).


def _choose_block_s(S, B, D, itemsize):
    per_pos = max(1, B * D * itemsize)
    return int(max(1, min(S, _TARGET_TILE_BYTES // per_pos)))


def _compiler_params(tile_bytes_total):
    # ~double-buffered inputs + output plus headroom; clamp to 64 MiB so the
    # request is grantable on v7x (64 MiB physical VMEM) as well as v5e/v6e.
    vmem_limit = int(min(64 << 20, max(16 << 20, 4 * tile_bytes_total)))
    return pltpu.CompilerParams(
        dimension_semantics=("parallel",),
        vmem_limit_bytes=vmem_limit,
    )


def positional_encoding(x, pe, *, dropout_p=0.1, training=False, rng=None,
                        block_s=None):
    """x: (S, B, D); pe: (max_len, 1, D). Returns dropout(x + pe[:S])."""
    S, B, D = x.shape
    max_len = pe.shape[0]
    assert S <= max_len, "sequence longer than positional table"

    if block_s is None:
        block_s = _choose_block_s(S, B, D, x.dtype.itemsize)
    ts = int(min(block_s, S))
    grid = (pl.cdiv(S, ts),)

    x_spec = pl.BlockSpec((ts, B, D), lambda s: (s, 0, 0))
    pe_spec = pl.BlockSpec((ts, 1, D), lambda s: (s, 0, 0))   # grid only covers [:S]
    out_spec = pl.BlockSpec((ts, B, D), lambda s: (s, 0, 0))
    out_shape = jax.ShapeDtypeStruct((S, B, D), x.dtype)

    x_tile = ts * B * D * x.dtype.itemsize
    pe_tile = ts * D * pe.dtype.itemsize

    if (not training) or float(dropout_p) <= 0.0:
        # Eval mode: dropout is identity (matches nn.Dropout.eval()).
        return pl.pallas_call(
            _add_pe_kernel,
            grid=grid,
            in_specs=[x_spec, pe_spec],
            out_specs=out_spec,
            out_shape=out_shape,
            compiler_params=_compiler_params(2 * x_tile + pe_tile),
        )(x, pe)

    # Training mode: counter-based random bits from the wrapper, thresholded in-kernel.
    if rng is None:
        rng = jax.random.PRNGKey(0)
    p = min(max(float(dropout_p), 0.0), 1.0 - 1e-7)           # keep 1/(1-p) finite
    threshold = min(int(round(p * 2.0 ** 32)), (1 << 32) - 1)
    inv_keep = 1.0 / (1.0 - p)
    bits = jax.random.bits(rng, (S, B, D), dtype=jnp.uint32)

    bits_spec = pl.BlockSpec((ts, B, D), lambda s: (s, 0, 0))
    kernel = functools.partial(_add_pe_dropout_kernel,
                               threshold=threshold, inv_keep=inv_keep)
    return pl.pallas_call(
        kernel,
        grid=grid,
        in_specs=[x_spec, pe_spec, bits_spec],
        out_specs=out_spec,
        out_shape=out_shape,
        compiler_params=_compiler_params(3 * x_tile + pe_tile),
    )(x, pe, bits)


# ---------------------------------------------------------------------------
# Demo / correctness check
# ---------------------------------------------------------------------------

if __name__ == "__main__":
    S, B, D = 64, 8, 128       # seq=64, batch=8, d_model=128 (lane/sublane-dense)
    MAX_LEN = 128
    DROPOUT_P = 0.1

    root = jax.random.PRNGKey(0)
    kx, kd = jax.random.split(root)
    x = jax.random.normal(kx, (S, B, D), dtype=jnp.float32)
    pe = make_pe(MAX_LEN, D, dtype=jnp.float32)
    ref = x + pe[:S]

    # Eval mode (dropout identity), auto tile size (single grid step here).
    y_eval = jax.block_until_ready(
        positional_encoding(x, pe, dropout_p=DROPOUT_P, training=False))
    assert y_eval.shape == (S, B, D)
    assert jnp.allclose(y_eval, ref, atol=1e-6), "eval-mode mismatch vs reference"

    # Eval mode with a small explicit tile to exercise a multi-step grid.
    y_eval_tiled = jax.block_until_ready(
        positional_encoding(x, pe, dropout_p=DROPOUT_P, training=False, block_s=16))
    assert jnp.allclose(y_eval_tiled, ref, atol=1e-6), "tiled eval-mode mismatch"

    # Training mode: exact check against a reference built from the same bits.
    y_train = jax.block_until_ready(
        positional_encoding(x, pe, dropout_p=DROPOUT_P, training=True, rng=kd))
    threshold = min(int(round(DROPOUT_P * 2.0 ** 32)), (1 << 32) - 1)
    bits = jax.random.bits(kd, (S, B, D), dtype=jnp.uint32)
    keep = bits >= jnp.uint32(threshold)
    ref_train = jnp.where(keep, ref / (1.0 - DROPOUT_P), 0.0)
    assert y_train.shape == (S, B, D)
    assert jnp.allclose(y_train, ref_train, atol=1e-5), "training-mode mismatch"
    drop_frac = float(1.0 - jnp.mean(keep.astype(jnp.float32)))
    assert 0.0 < drop_frac < 0.25, "dropout rate far from p"

    print("KERNEL_OK")
</pallas_src>

<mosaic_0001>
module attributes {stable_mosaic.version = 11 : i64} {
  func.func @_add_pe_kernel(%arg0: i32, %arg1: memref<64x8x128xf32, #tpu.memory_space<vmem>>, %arg2: memref<64x1x128xf32, #tpu.memory_space<vmem>>, %arg3: memref<64x8x128xf32, #tpu.memory_space<vmem>>) attributes {dimension_semantics = [#tpu.dimension_semantics<parallel>], iteration_bounds = array<i64: 1>, scalar_prefetch = 0 : i64, scratch_operands = 0 : i64, tpu.core_type = #tpu.core_type<tc>, window_params = [{transform_indices = @transform_0, window_bounds = array<i64: 64, 8, 128>}, {transform_indices = @transform_1, window_bounds = array<i64: 64, 1, 128>}, {transform_indices = @transform_2, window_bounds = array<i64: 64, 8, 128>}]} {
    %c0 = arith.constant 0 : index
    %c0_0 = arith.constant 0 : index
    %c0_1 = arith.constant 0 : index
    %0 = vector.load %arg1[%c0, %c0_0, %c0_1] : memref<64x8x128xf32, #tpu.memory_space<vmem>>, vector<64x8x128xf32>
    %c0_2 = arith.constant 0 : index
    %c0_3 = arith.constant 0 : index
    %c0_4 = arith.constant 0 : index
    %1 = vector.load %arg2[%c0_2, %c0_3, %c0_4] : memref<64x1x128xf32, #tpu.memory_space<vmem>>, vector<64x1x128xf32>
    %2 = vector.broadcast %1 : vector<64x1x128xf32> to vector<64x8x128xf32>
    %3 = arith.addf %0, %2 : vector<64x8x128xf32>
    %c0_5 = arith.constant 0 : index
    %c0_6 = arith.constant 0 : index
    %c0_7 = arith.constant 0 : index
    %4 = vector.load %arg3[%c0_5, %c0_6, %c0_7] : memref<64x8x128xf32, #tpu.memory_space<vmem>>, vector<64x8x128xf32>
    tpu.vector_store %arg3[%c0_5, %c0_6, %c0_7], %3 {strides = array<i32>} : memref<64x8x128xf32, #tpu.memory_space<vmem>>, vector<64x8x128xf32>,
    return
  }
  func.func @transform_0(%arg0: i32) -> (i32, i32, i32) {
    %c0_i32 = arith.constant 0 : i32
    %c0_i32_0 = arith.constant 0 : i32
    %c0_i32_1 = arith.constant 0 : i32
    return %arg0, %c0_i32, %c0_i32_0 : i32, i32, i32
  }
  func.func @transform_1(%arg0: i32) -> (i32, i32, i32) {
    %c0_i32 = arith.constant 0 : i32
    %c0_i32_0 = arith.constant 0 : i32
    %c0_i32_1 = arith.constant 0 : i32
    return %arg0, %c0_i32, %c0_i32_0 : i32, i32, i32
  }
  func.func @transform_2(%arg0: i32) -> (i32, i32, i32) {
    %c0_i32 = arith.constant 0 : i32
    %c0_i32_0 = arith.constant 0 : i32
    %c0_i32_1 = arith.constant 0 : i32
    return %arg0, %c0_i32, %c0_i32_0 : i32, i32, i32
  }
}

</mosaic_0001>

<bundles_post_ra>
// kernel: tpu_custom_call.1
= control target key start
LH: loop header
LB: loop body
LE: loop exit
PB: predicated region body
PF: predicated region fallthrough
CT: control target
= control target key end

     0   :  { %7 = vsyncpa [#allocation3], 0  ;;  %s908_s0 = inlined_call_operand.hbm [shape: f32[64,8,128], index: 0, kind: input, shape index: {}]   ;;  %s909_s1 = inlined_call_operand.hbm [shape: f32[128,1,128], index: 1, kind: input, shape index: {}]   ;;  %s910_s2 = inlined_call_operand.hbm [shape: f32[64,8,128], index: 2, kind: output, shape index: {}]  }
   0x1   :  { %8 = vsyncpa [#allocation6], 0 }
   0x2   :  { %9 = vsyncpa [#allocation4], 0  ;;  %s841_s9 = smov [#allocation2]   ;;  %s769_s13 = scalar_lea.hbm %s908_s0, 8192 }
   0x3   :  { %s15_s10 = sshll.u32 %s841_s9, 4  ;;  %p770_p0 = scmp.ne.s32.totalorder %s908_s0, %s769_s13  ;;  %s16_s10 = int_to_ptr.vmem [resolvable:$true] %s15_s10 }
   0x4   :  { %p773_p1 = scmp.lt.u32.totalorder %s769_s13, %s908_s0 }
   0x6   :  { %p775_p2 = pnand %p773_p1, %p770_p0 }
   0x8   :  { %778 = shalt.err (!%p775_p2)
}
   0x9   :  { %s779_s18 = scalar_lea.vmem %s16_s10, 8192  ;;  %p784_p4 = scmp.lt.s32.totalorder %s16_s10, %s16_s10 }
   0xa   :  { %p780_p3 = scmp.ne.s32.totalorder %s16_s10, %s779_s18  ;;  %p785_p5 = scmp.lt.s32.totalorder %s779_s18, %s779_s18 }
   0xc   :  { %p786_p6 = por %p785_p5, %p784_p4 }
   0xe   :  { %p787_p7 = pnand %p786_p6, %p780_p3 }
  0x10   :  { %790 = shalt.err (!%p787_p7)
}
  0x11   :  { %s842_s19 = smov 128   ;;  %s843_s20 = smov 8  }
  0x12   :  { %21 = dma.hbm_to_vmem [thread:$0]  %s908_s0, 8192, %s16_s10, [#allocation3], %s842_s19, %s842_s19, %s843_s20  }
  0x13   :  { %s844_s23 = smov [#allocation5]   ;;  %s791_s27 = scalar_lea.hbm %s909_s1, 1024 }
  0x14   :  { %s27_s24 = sshll.u32 %s844_s23, 4  ;;  %p792_p8 = scmp.ne.s32.totalorder %s909_s1, %s791_s27  ;;  %s28_s24 = int_to_ptr.vmem [resolvable:$true] %s27_s24 }
  0x15   :  { %s793_s4 = scalar_lea.hbm %s909_s1, 2048  ;;  %p795_p10 = scmp.lt.u32.totalorder %s791_s27, %s909_s1 }
  0x16   :  { %p794_p9 = scmp.lt.u32.totalorder %s793_s4, %s791_s27 }
  0x18   :  { %p796_p11 = por %p795_p10, %p794_p9 }
  0x1a   :  { %p797_p12 = pnand %p796_p11, %p792_p8 }
  0x1c   :  { %800 = shalt.err (!%p797_p12)
}
  0x1d   :  { %s801_s0 = scalar_lea.vmem %s28_s24, 1024  ;;  %p806_p0 = scmp.lt.s32.totalorder %s28_s24, %s28_s24 }
  0x1e   :  { %p802_p13 = scmp.ne.s32.totalorder %s28_s24, %s801_s0  ;;  %p807_p1 = scmp.lt.s32.totalorder %s801_s0, %s801_s0 }
  0x20   :  { %p808_p2 = por %p807_p1, %p806_p0 }
  0x22   :  { %p809_p3 = pnand %p808_p2, %p802_p13 }
  0x24   :  { %812 = shalt.err (!%p809_p3)
}
  0x25   :  { %s845_s7 = smov 16   ;;  %s846_s8 = smov 1  }
  0x26   :  { %33 = dma.hbm_to_vmem [thread:$0]  %s909_s1, 1024, %s28_s24, [#allocation6], %s845_s7, %s845_s7, %s846_s8  }
  0x27   :  { %835 = dma.done.wait [#allocation3], 8192  }
  0x28   :  { %836 = vsyncadd [#allocation3], 4294959104 }
  0x29   :  { %837 = dma.done.wait [#allocation6], 1024  }
  0x2a   :  { %838 = vsyncadd [#allocation6], 4294966272  ;;  %v40_v0 = vld [vmem:[#allocation2] sm:$0xff]  ;;  %v41_v2 = vld [vmem:[#allocation2 + $0x8] sm:$0xff]  ;;  %s847_s1 = smov [#allocation7]  }
  0x2b   :  { %v698_v1 = vld [vmem:[#allocation5] ss:$0 sm:$0xff]  ;;  %v699_v4 = vld [vmem:[#allocation5 + $0x1] ss:$0 sm:$0xff]  ;;  %v42_v5 = vld [vmem:[#allocation2 + $0x10] sm:$0xff]  ;;  %s685_s11 = sshll.u32 %s847_s1, 4  ;;  %s686_s11 = int_to_ptr.vmem [resolvable:$true] %s685_s11 }
  0x2c   :  { %v552_v3 = vadd.f32 %v698_v1, %v40_v0  ;;  %v700_v6 = vld [vmem:[#allocation5 + $0x2] ss:$0 sm:$0xff]  ;;  %v553_v7 = vadd.f32 %v699_v4, %v41_v2  ;;  %v43_v9 = vld [vmem:[#allocation2 + $0x18] sm:$0xff]  ;;  %v701_v10 = vld [vmem:[#allocation5 + $0x3] ss:$0 sm:$0xff]  ;;  %s813_s12 = scalar_lea.vmem %s686_s11, 8192  ;;  %p818_p5 = scmp.lt.s32.totalorder %s686_s11, %s686_s11 }
  0x2d   :  { %v554_v8 = vadd.f32 %v700_v6, %v42_v5  ;;  %v44_v11 = vld [vmem:[#allocation2 + $0x20] sm:$0xff]  ;;  %v555_v12 = vadd.f32 %v701_v10, %v43_v9  ;;  %v45_v14 = vld [vmem:[#allocation2 + $0x28] sm:$0xff]  ;;  %v46_v18 = vld [vmem:[#allocation2 + $0x30] sm:$0xff]  ;;  %p814_p4 = scmp.ne.s32.totalorder %s686_s11, %s813_s12  ;;  %p819_p6 = scmp.lt.s32.totalorder %s813_s12, %s813_s12 }
  0x2e   :  { %616 = vst [vmem:[#allocation7] sm:$0xff] %v552_v3  ;;  %v702_v13 = vld [vmem:[#allocation5 + $0x4] ss:$0 sm:$0xff]  ;;  %v703_v15 = vld [vmem:[#allocation5 + $0x5] ss:$0 sm:$0xff]  ;;  %617 = vst [vmem:[#allocation7 + $0x8] sm:$0xff] %v553_v7 }
  0x2f   :  { %618 = vst [vmem:[#allocation7 + $0x10] sm:$0xff] %v554_v8  ;;  %v556_v16 = vadd.f32 %v702_v13, %v44_v11  ;;  %v557_v17 = vadd.f32 %v703_v15, %v45_v14  ;;  %v704_v19 = vld [vmem:[#allocation5 + $0x6] ss:$0 sm:$0xff]  ;;  %v47_v20 = vld [vmem:[#allocation2 + $0x38] sm:$0xff]  ;;  %619 = vst [vmem:[#allocation7 + $0x18] sm:$0xff] %v555_v12  ;;  %p820_p7 = por %p819_p6, %p818_p5 }
  0x30   :  { %v558_v21 = vadd.f32 %v704_v19, %v46_v18  ;;  %v705_v22 = vld [vmem:[#allocation5 + $0x7] ss:$0 sm:$0xff]  ;;  %v706_v24 = vld [vmem:[#allocation5 + $0x8] ss:$0 sm:$0xff]  ;;  %v707_v28 = vld [vmem:[#allocation5 + $0x9] ss:$0 sm:$0xff] }
  0x31   :  { %v48_v23 = vld [vmem:[#allocation2 + $0x40] sm:$0xff]  ;;  %620 = vst [vmem:[#allocation7 + $0x20] sm:$0xff] %v556_v16  ;;  %621 = vst [vmem:[#allocation7 + $0x28] sm:$0xff] %v557_v17  ;;  %v559_v25 = vadd.f32 %v705_v22, %v47_v20  ;;  %v49_v27 = vld [vmem:[#allocation2 + $0x48] sm:$0xff]  ;;  %p821_p8 = pnand %p820_p7, %p814_p4 }
  0x32   :  { %v560_v26 = vadd.f32 %v706_v24, %v48_v23  ;;  %v50_v29 = vld [vmem:[#allocation2 + $0x50] sm:$0xff]  ;;  %622 = vst [vmem:[#allocation7 + $0x30] sm:$0xff] %v558_v21  ;;  %v561_v30 = vadd.f32 %v707_v28, %v49_v27  ;;  %v708_v31 = vld [vmem:[#allocation5 + $0xa] ss:$0 sm:$0xff]  ;;  %v51_v32 = vld [vmem:[#allocation2 + $0x58] sm:$0xff] }
  0x33   :  { %v709_v33 = vld [vmem:[#allocation5 + $0xb] ss:$0 sm:$0xff]  ;;  %623 = vst [vmem:[#allocation7 + $0x38] sm:$0xff] %v559_v25  ;;  %v562_v34 = vadd.f32 %v708_v31, %v50_v29  ;;  %v52_v36 = vld [vmem:[#allocation2 + $0x60] sm:$0xff]  ;;  %v710_v37 = vld [vmem:[#allocation5 + $0xc] ss:$0 sm:$0xff] }
  0x34   :  { %624 = vst [vmem:[#allocation7 + $0x40] sm:$0xff] %v560_v26  ;;  %v563_v35 = vadd.f32 %v709_v33, %v51_v32  ;;  %v53_v38 = vld [vmem:[#allocation2 + $0x68] sm:$0xff]  ;;  %625 = vst [vmem:[#allocation7 + $0x48] sm:$0xff] %v561_v30  ;;  %v564_v39 = vadd.f32 %v710_v37, %v52_v36  ;;  %v54_v41 = vld [vmem:[#allocation2 + $0x70] sm:$0xff] }
  0x35   :  { %v711_v40 = vld [vmem:[#allocation5 + $0xd] ss:$0 sm:$0xff]  ;;  %v712_v42 = vld [vmem:[#allocation5 + $0xe] ss:$0 sm:$0xff]  ;;  %626 = vst [vmem:[#allocation7 + $0x50] sm:$0xff] %v562_v34  ;;  %v55_v45 = vld [vmem:[#allocation2 + $0x78] sm:$0xff] }
  0x36   :  { %627 = vst [vmem:[#allocation7 + $0x58] sm:$0xff] %v563_v35  ;;  %v565_v43 = vadd.f32 %v711_v40, %v53_v38  ;;  %v566_v44 = vadd.f32 %v712_v42, %v54_v41  ;;  %v713_v46 = vld [vmem:[#allocation5 + $0xf] ss:$0 sm:$0xff]  ;;  %v56_v47 = vld [vmem:[#allocation2 + $0x80] sm:$0xff]  ;;  %628 = vst [vmem:[#allocation7 + $0x60] sm:$0xff] %v564_v39 }
  0x37   :  { %v567_v48 = vadd.f32 %v713_v46, %v55_v45  ;;  %v714_v49 = vld [vmem:[#allocation5 + $0x10] ss:$0 sm:$0xff]  ;;  %v57_v50 = vld [vmem:[#allocation2 + $0x88] sm:$0xff]  ;;  %v715_v51 = vld [vmem:[#allocation5 + $0x11] ss:$0 sm:$0xff] }
  0x38   :  { %629 = vst [vmem:[#allocation7 + $0x68] sm:$0xff] %v565_v43  ;;  %630 = vst [vmem:[#allocation7 + $0x70] sm:$0xff] %v566_v44  ;;  %v568_v52 = vadd.f32 %v714_v49, %v56_v47  ;;  %v569_v53 = vadd.f32 %v715_v51, %v57_v50  ;;  %v58_v54 = vld [vmem:[#allocation2 + $0x90] sm:$0xff]  ;;  %v59_v56 = vld [vmem:[#allocation2 + $0x98] sm:$0xff] }
  0x39   :  { %v716_v55 = vld [vmem:[#allocation5 + $0x12] ss:$0 sm:$0xff]  ;;  %631 = vst [vmem:[#allocation7 + $0x78] sm:$0xff] %v567_v48  ;;  %v717_v58 = vld [vmem:[#allocation5 + $0x13] ss:$0 sm:$0xff]  ;;  %v60_v59 = vld [vmem:[#allocation2 + $0xa0] sm:$0xff] }
  0x3a   :  { %v570_v57 = vadd.f32 %v716_v55, %v58_v54  ;;  %v718_v60 = vld [vmem:[#allocation5 + $0x14] ss:$0 sm:$0xff]  ;;  %632 = vst [vmem:[#allocation7 + $0x80] sm:$0xff] %v568_v52  ;;  %633 = vst [vmem:[#allocation7 + $0x88] sm:$0xff] %v569_v53  ;;  %v571_v61 = vadd.f32 %v717_v58, %v59_v56  ;;  %v61_v63 = vld [vmem:[#allocation2 + $0xa8] sm:$0xff] }
  0x3b   :  { %v572_v62 = vadd.f32 %v718_v60, %v60_v59  ;;  %v719_v0 = vld [vmem:[#allocation5 + $0x15] ss:$0 sm:$0xff]  ;;  %v720_v3 = vld [vmem:[#allocation5 + $0x16] ss:$0 sm:$0xff]  ;;  %v63_v4 = vld [vmem:[#allocation2 + $0xb8] sm:$0xff] }
  0x3c   :  { %v62_v1 = vld [vmem:[#allocation2 + $0xb0] sm:$0xff]  ;;  %634 = vst [vmem:[#allocation7 + $0x90] sm:$0xff] %v570_v57  ;;  %v573_v2 = vadd.f32 %v719_v0, %v61_v63  ;;  %635 = vst [vmem:[#allocation7 + $0x98] sm:$0xff] %v571_v61  ;;  %v64_v8 = vld [vmem:[#allocation2 + $0xc0] sm:$0xff] }
  0x3d   :  { %v721_v5 = vld [vmem:[#allocation5 + $0x17] ss:$0 sm:$0xff]  ;;  %636 = vst [vmem:[#allocation7 + $0xa0] sm:$0xff] %v572_v62  ;;  %v574_v6 = vadd.f32 %v720_v3, %v62_v1  ;;  %v722_v9 = vld [vmem:[#allocation5 + $0x18] ss:$0 sm:$0xff]  ;;  %v65_v10 = vld [vmem:[#allocation2 + $0xc8] sm:$0xff] }
  0x3e   :  { %v575_v7 = vadd.f32 %v721_v5, %v63_v4  ;;  %637 = vst [vmem:[#allocation7 + $0xa8] sm:$0xff] %v573_v2  ;;  %v576_v11 = vadd.f32 %v722_v9, %v64_v8  ;;  %v723_v12 = vld [vmem:[#allocation5 + $0x19] ss:$0 sm:$0xff]  ;;  %v66_v13 = vld [vmem:[#allocation2 + $0xd0] sm:$0xff]  ;;  %v724_v14 = vld [vmem:[#allocation5 + $0x1a] ss:$0 sm:$0xff] }
  0x3f   :  { %638 = vst [vmem:[#allocation7 + $0xb0] sm:$0xff] %v574_v6  ;;  %v577_v15 = vadd.f32 %v723_v12, %v65_v10  ;;  %v578_v16 = vadd.f32 %v724_v14, %v66_v13  ;;  %v67_v17 = vld [vmem:[#allocation2 + $0xd8] sm:$0xff]  ;;  %v68_v19 = vld [vmem:[#allocation2 + $0xe0] sm:$0xff]  ;;  %v69_v22 = vld [vmem:[#allocation2 + $0xe8] sm:$0xff] }
  0x40   :  { %639 = vst [vmem:[#allocation7 + $0xb8] sm:$0xff] %v575_v7  ;;  %v725_v18 = vld [vmem:[#allocation5 + $0x1b] ss:$0 sm:$0xff]  ;;  %640 = vst [vmem:[#allocation7 + $0xc0] sm:$0xff] %v576_v11  ;;  %v726_v21 = vld [vmem:[#allocation5 + $0x1c] ss:$0 sm:$0xff] }
  0x41   :  { %v579_v20 = vadd.f32 %v725_v18, %v67_v17  ;;  %v727_v23 = vld [vmem:[#allocation5 + $0x1d] ss:$0 sm:$0xff]  ;;  %641 = vst [vmem:[#allocation7 + $0xc8] sm:$0xff] %v577_v15  ;;  %642 = vst [vmem:[#allocation7 + $0xd0] sm:$0xff] %v578_v16  ;;  %v580_v24 = vadd.f32 %v726_v21, %v68_v19  ;;  %v70_v26 = vld [vmem:[#allocation2 + $0xf0] sm:$0xff] }
  0x42   :  { %v581_v25 = vadd.f32 %v727_v23, %v69_v22  ;;  %v728_v27 = vld [vmem:[#allocation5 + $0x1e] ss:$0 sm:$0xff]  ;;  %v729_v30 = vld [vmem:[#allocation5 + $0x1f] ss:$0 sm:$0xff]  ;;  %v72_v31 = vld [vmem:[#allocation2 + $0x100] sm:$0xff] }
  0x43   :  { %v71_v28 = vld [vmem:[#allocation2 + $0xf8] sm:$0xff]  ;;  %643 = vst [vmem:[#allocation7 + $0xd8] sm:$0xff] %v579_v20  ;;  %v582_v29 = vadd.f32 %v728_v27, %v70_v26  ;;  %v730_v32 = vld [vmem:[#allocation5 + $0x20] ss:$0 sm:$0xff]  ;;  %644 = vst [vmem:[#allocation7 + $0xe0] sm:$0xff] %v580_v24 }
  0x44   :  { %645 = vst [vmem:[#allocation7 + $0xe8] sm:$0xff] %v581_v25  ;;  %v583_v33 = vadd.f32 %v729_v30, %v71_v28  ;;  %v584_v34 = vadd.f32 %v730_v32, %v72_v31  ;;  %v73_v35 = vld [vmem:[#allocation2 + $0x108] sm:$0xff]  ;;  %v731_v36 = vld [vmem:[#allocation5 + $0x21] ss:$0 sm:$0xff]  ;;  %v74_v37 = vld [vmem:[#allocation2 + $0x110] sm:$0xff] }
  0x45   :  { %646 = vst [vmem:[#allocation7 + $0xf0] sm:$0xff] %v582_v29  ;;  %v585_v38 = vadd.f32 %v731_v36, %v73_v35  ;;  %v732_v39 = vld [vmem:[#allocation5 + $0x22] ss:$0 sm:$0xff]  ;;  %v75_v40 = vld [vmem:[#allocation2 + $0x118] sm:$0xff]  ;;  %v733_v41 = vld [vmem:[#allocation5 + $0x23] ss:$0 sm:$0xff] }
  0x46   :  { %647 = vst [vmem:[#allocation7 + $0xf8] sm:$0xff] %v583_v33  ;;  %648 = vst [vmem:[#allocation7 + $0x100] sm:$0xff] %v584_v34  ;;  %v586_v42 = vadd.f32 %v732_v39, %v74_v37  ;;  %v587_v43 = vadd.f32 %v733_v41, %v75_v40  ;;  %v76_v44 = vld [vmem:[#allocation2 + $0x120] sm:$0xff]  ;;  %v77_v46 = vld [vmem:[#allocation2 + $0x128] sm:$0xff] }
  0x47   :  { %v734_v45 = vld [vmem:[#allocation5 + $0x24] ss:$0 sm:$0xff]  ;;  %649 = vst [vmem:[#allocation7 + $0x108] sm:$0xff] %v585_v38  ;;  %v735_v48 = vld [vmem:[#allocation5 + $0x25] ss:$0 sm:$0xff]  ;;  %v78_v49 = vld [vmem:[#allocation2 + $0x130] sm:$0xff] }
  0x48   :  { %v588_v47 = vadd.f32 %v734_v45, %v76_v44  ;;  %v736_v50 = vld [vmem:[#allocation5 + $0x26] ss:$0 sm:$0xff]  ;;  %650 = vst [vmem:[#allocation7 + $0x110] sm:$0xff] %v586_v42  ;;  %651 = vst [vmem:[#allocation7 + $0x118] sm:$0xff] %v587_v43  ;;  %v589_v51 = vadd.f32 %v735_v48, %v77_v46  ;;  %v79_v53 = vld [vmem:[#allocation2 + $0x138] sm:$0xff] }
  0x49   :  { %v590_v52 = vadd.f32 %v736_v50, %v78_v49  ;;  %v737_v54 = vld [vmem:[#allocation5 + $0x27] ss:$0 sm:$0xff]  ;;  %v738_v57 = vld [vmem:[#allocation5 + $0x28] ss:$0 sm:$0xff]  ;;  %v739_v59 = vld [vmem:[#allocation5 + $0x29] ss:$0 sm:$0xff] }
  0x4a   :  { %v80_v55 = vld [vmem:[#allocation2 + $0x140] sm:$0xff]  ;;  %652 = vst [vmem:[#allocation7 + $0x120] sm:$0xff] %v588_v47  ;;  %v591_v56 = vadd.f32 %v737_v54, %v79_v53  ;;  %v81_v58 = vld [vmem:[#allocation2 + $0x148] sm:$0xff]  ;;  %653 = vst [vmem:[#allocation7 + $0x128] sm:$0xff] %v589_v51 }
  0x4b   :  { %654 = vst [vmem:[#allocation7 + $0x130] sm:$0xff] %v590_v52  ;;  %v592_v60 = vadd.f32 %v738_v57, %v80_v55  ;;  %v593_v61 = vadd.f32 %v739_v59, %v81_v58  ;;  %v82_v62 = vld [vmem:[#allocation2 + $0x150] sm:$0xff]  ;;  %v740_v63 = vld [vmem:[#allocation5 + $0x2a] ss:$0 sm:$0xff]  ;;  %v83_v0 = vld [vmem:[#allocation2 + $0x158] sm:$0xff] }
  0x4c   :  { %655 = vst [vmem:[#allocation7 + $0x138] sm:$0xff] %v591_v56  ;;  %v594_v1 = vadd.f32 %v740_v63, %v82_v62  ;;  %v741_v2 = vld [vmem:[#allocation5 + $0x2b] ss:$0 sm:$0xff]  ;;  %v84_v3 = vld [vmem:[#allocation2 + $0x160] sm:$0xff]  ;;  %v742_v4 = vld [vmem:[#allocation5 + $0x2c] ss:$0 sm:$0xff] }
  0x4d   :  { %656 = vst [vmem:[#allocation7 + $0x140] sm:$0xff] %v592_v60  ;;  %657 = vst [vmem:[#allocation7 + $0x148] sm:$0xff] %v593_v61  ;;  %v595_v5 = vadd.f32 %v741_v2, %v83_v0  ;;  %v596_v6 = vadd.f32 %v742_v4, %v84_v3  ;;  %v85_v7 = vld [vmem:[#allocation2 + $0x168] sm:$0xff]  ;;  %v86_v9 = vld [vmem:[#allocation2 + $0x170] sm:$0xff] }
  0x4e   :  { %v743_v8 = vld [vmem:[#allocation5 + $0x2d] ss:$0 sm:$0xff]  ;;  %658 = vst [vmem:[#allocation7 + $0x150] sm:$0xff] %v594_v1  ;;  %v744_v11 = vld [vmem:[#allocation5 + $0x2e] ss:$0 sm:$0xff]  ;;  %v87_v12 = vld [vmem:[#allocation2 + $0x178] sm:$0xff] }
  0x4f   :  { %v597_v10 = vadd.f32 %v743_v8, %v85_v7  ;;  %v745_v13 = vld [vmem:[#allocation5 + $0x2f] ss:$0 sm:$0xff]  ;;  %659 = vst [vmem:[#allocation7 + $0x158] sm:$0xff] %v595_v5  ;;  %660 = vst [vmem:[#allocation7 + $0x160] sm:$0xff] %v596_v6  ;;  %v598_v14 = vadd.f32 %v744_v11, %v86_v9  ;;  %v88_v16 = vld [vmem:[#allocation2 + $0x180] sm:$0xff] }
  0x50   :  { %v599_v15 = vadd.f32 %v745_v13, %v87_v12  ;;  %v746_v17 = vld [vmem:[#allocation5 + $0x30] ss:$0 sm:$0xff]  ;;  %v89_v18 = vld [vmem:[#allocation2 + $0x188] sm:$0xff]  ;;  %v747_v20 = vld [vmem:[#allocation5 + $0x31] ss:$0 sm:$0xff] }
  0x51   :  { %661 = vst [vmem:[#allocation7 + $0x168] sm:$0xff] %v597_v10  ;;  %v600_v19 = vadd.f32 %v746_v17, %v88_v16  ;;  %v90_v21 = vld [vmem:[#allocation2 + $0x190] sm:$0xff]  ;;  %662 = vst [vmem:[#allocation7 + $0x170] sm:$0xff] %v598_v14  ;;  %v601_v23 = vadd.f32 %v747_v20, %v89_v18  ;;  %v91_v25 = vld [vmem:[#allocation2 + $0x198] sm:$0xff] }
  0x52   :  { %v748_v22 = vld [vmem:[#allocation5 + $0x32] ss:$0 sm:$0xff]  ;;  %663 = vst [vmem:[#allocation7 + $0x178] sm:$0xff] %v599_v15  ;;  %v749_v26 = vld [vmem:[#allocation5 + $0x33] ss:$0 sm:$0xff]  ;;  %v92_v27 = vld [vmem:[#allocation2 + $0x1a0] sm:$0xff] }
  0x53   :  { %v602_v24 = vadd.f32 %v748_v22, %v90_v21  ;;  %664 = vst [vmem:[#allocation7 + $0x180] sm:$0xff] %v600_v19  ;;  %v603_v28 = vadd.f32 %v749_v26, %v91_v25  ;;  %v750_v29 = vld [vmem:[#allocation5 + $0x34] ss:$0 sm:$0xff]  ;;  %v93_v30 = vld [vmem:[#allocation2 + $0x1a8] sm:$0xff]  ;;  %v751_v31 = vld [vmem:[#allocation5 + $0x35] ss:$0 sm:$0xff] }
  0x54   :  { %665 = vst [vmem:[#allocation7 + $0x188] sm:$0xff] %v601_v23  ;;  %v604_v32 = vadd.f32 %v750_v29, %v92_v27  ;;  %v605_v33 = vadd.f32 %v751_v31, %v93_v30  ;;  %v94_v34 = vld [vmem:[#allocation2 + $0x1b0] sm:$0xff]  ;;  %v95_v36 = vld [vmem:[#allocation2 + $0x1b8] sm:$0xff]  ;;  %v96_v39 = vld [vmem:[#allocation2 + $0x1c0] sm:$0xff] }
  0x55   :  { %666 = vst [vmem:[#allocation7 + $0x190] sm:$0xff] %v602_v24  ;;  %v752_v35 = vld [vmem:[#allocation5 + $0x36] ss:$0 sm:$0xff]  ;;  %667 = vst [vmem:[#allocation7 + $0x198] sm:$0xff] %v603_v28  ;;  %v753_v38 = vld [vmem:[#allocation5 + $0x37] ss:$0 sm:$0xff] }
  0x56   :  { %v606_v37 = vadd.f32 %v752_v35, %v94_v34  ;;  %v754_v40 = vld [vmem:[#allocation5 + $0x38] ss:$0 sm:$0xff]  ;;  %668 = vst [vmem:[#allocation7 + $0x1a0] sm:$0xff] %v604_v32  ;;  %669 = vst [vmem:[#allocation7 + $0x1a8] sm:$0xff] %v605_v33  ;;  %v607_v41 = vadd.f32 %v753_v38, %v95_v36  ;;  %v97_v43 = vld [vmem:[#allocation2 + $0x1c8] sm:$0xff] }
  0x57   :  { %v608_v42 = vadd.f32 %v754_v40, %v96_v39  ;;  %v755_v44 = vld [vmem:[#allocation5 + $0x39] ss:$0 sm:$0xff]  ;;  %v98_v45 = vld [vmem:[#allocation2 + $0x1d0] sm:$0xff]  ;;  %v756_v47 = vld [vmem:[#allocation5 + $0x3a] ss:$0 sm:$0xff] }
  0x58   :  { %670 = vst [vmem:[#allocation7 + $0x1b0] sm:$0xff] %v606_v37  ;;  %v609_v46 = vadd.f32 %v755_v44, %v97_v43  ;;  %v99_v48 = vld [vmem:[#allocation2 + $0x1d8] sm:$0xff]  ;;  %671 = vst [vmem:[#allocation7 + $0x1b8] sm:$0xff] %v607_v41  ;;  %v610_v50 = vadd.f32 %v756_v47, %v98_v45  ;;  %v100_v52 = vld [vmem:[#allocation2 + $0x1e0] sm:$0xff] }
  0x59   :  { %v757_v49 = vld [vmem:[#allocation5 + $0x3b] ss:$0 sm:$0xff]  ;;  %672 = vst [vmem:[#allocation7 + $0x1c0] sm:$0xff] %v608_v42  ;;  %v758_v53 = vld [vmem:[#allocation5 + $0x3c] ss:$0 sm:$0xff]  ;;  %v101_v54 = vld [vmem:[#allocation2 + $0x1e8] sm:$0xff] }
  0x5a   :  { %v611_v51 = vadd.f32 %v757_v49, %v99_v48  ;;  %673 = vst [vmem:[#allocation7 + $0x1c8] sm:$0xff] %v609_v46  ;;  %v612_v55 = vadd.f32 %v758_v53, %v100_v52  ;;  %v759_v56 = vld [vmem:[#allocation5 + $0x3d] ss:$0 sm:$0xff]  ;;  %v102_v57 = vld [vmem:[#allocation2 + $0x1f0] sm:$0xff]  ;;  %v760_v58 = vld [vmem:[#allocation5 + $0x3e] ss:$0 sm:$0xff] }
  0x5b   :  { %674 = vst [vmem:[#allocation7 + $0x1d0] sm:$0xff] %v610_v50  ;;  %v613_v59 = vadd.f32 %v759_v56, %v101_v54  ;;  %v614_v60 = vadd.f32 %v760_v58, %v102_v57  ;;  %v103_v61 = vld [vmem:[#allocation2 + $0x1f8] sm:$0xff] }
  0x5c   :  { %675 = vst [vmem:[#allocation7 + $0x1d8] sm:$0xff] %v611_v51  ;;  %v761_v62 = vld [vmem:[#allocation5 + $0x3f] ss:$0 sm:$0xff]  ;;  %676 = vst [vmem:[#allocation7 + $0x1e0] sm:$0xff] %v612_v55 }
  0x5d   :  { %v615_v63 = vadd.f32 %v761_v62, %v103_v61  ;;  %677 = vst [vmem:[#allocation7 + $0x1e8] sm:$0xff] %v613_v59  ;;  %678 = vst [vmem:[#allocation7 + $0x1f0] sm:$0xff] %v614_v60 }
  0x5f   :  { %679 = vst [vmem:[#allocation7 + $0x1f8] sm:$0xff] %v615_v63 }
  0x60   :  { %824 = shalt.err (!%p821_p8)
}
  0x61   :  { %s825_s15 = scalar_lea.hbm %s910_s2, 8192 }
  0x62   :  { %p826_p9 = scmp.ne.s32.totalorder %s910_s2, %s825_s15  ;;  %p829_p10 = scmp.lt.u32.totalorder %s825_s15, %s910_s2 }
  0x64   :  { %p831_p11 = pnand %p829_p10, %p826_p9 }
  0x66   :  { %834 = shalt.err (!%p831_p11)
}
  0x67   :  { %691 = dma.vmem_to_hbm [thread:$0]  %s686_s11, 8192, %s910_s2, [#allocation4], %s842_s19, %s842_s19, %s843_s20  }
  0x68   :  { %839 = dma.done.wait [#allocation4], 8192  }
  0x69   :  { %840 = vsyncadd [#allocation4], 4294959104 }
  0x6a   :  { %695 = vsyncpa [#allocation3], 1 }
  0x6b   :  { %696 = vsyncpa [#allocation6], 1 }
  0x6c   :  { %697 = vsyncpa [#allocation4], 1 }

</bundles_post_ra>
